<compile_context>
chip_gen: v6e
topology: v6e:2x2x1
jax: 0.10.0
libtpu: 0.0.40
codegen_flags: <defaults>
</compile_context>

<pallas_src>
import math
import jax
import jax.numpy as jnp
from jax.experimental import pallas as pl
from jax.experimental.pallas import tpu as pltpu

_LANE = 128


# ----------------------------- Pallas kernel --------------------------------
def _mlp_kernel(g_ref, a_ref, w1g_ref, w1a_ref, b1_ref,
                w2_ref, b2_ref, w3_ref, b3_ref, o_ref):
    # Layer 1: concat(g, a) @ W1 + b1  ==  g @ W1g + a @ W1a + b1   (f32 accum)
    h = (jnp.dot(g_ref[...], w1g_ref[...], preferred_element_type=jnp.float32)
         + jnp.dot(a_ref[...], w1a_ref[...], preferred_element_type=jnp.float32)
         + b1_ref[...])
    h = jnp.maximum(h, 0.0).astype(w2_ref.dtype)
    # Layer 2
    h = jnp.dot(h, w2_ref[...], preferred_element_type=jnp.float32) + b2_ref[...]
    h = jnp.maximum(h, 0.0).astype(w3_ref.dtype)
    # Layer 3 (output columns zero-padded to a lane-dense 128-wide block)
    out = jnp.dot(h, w3_ref[...], preferred_element_type=jnp.float32) + b3_ref[...]
    o_ref[...] = out.astype(o_ref.dtype)


def uncertainty_mlp_forward(gembedding, aembedding, params, *,
                            tile_m=None, use_bf16=False):
    """Pallas implementation of UncertaintyModel.forward (3-layer MLP)."""
    w1, b1, w2, b2, w3, b3 = params          # weights stored (in_features, out_features)
    n, d_g = gembedding.shape
    _, d_a = aembedding.shape
    hidden = w1.shape[1]
    n_off = w3.shape[1]

    # Split W1 so we never materialize the concatenated activations in HBM.
    w1g = w1[:d_g, :]
    w1a = w1[d_g:, :]

    # Lane-dense output: zero-pad W3/b3 columns up to a multiple of 128.
    n_pad = max(_LANE, ((n_off + _LANE - 1) // _LANE) * _LANE)
    w3p = jnp.zeros((hidden, n_pad), w3.dtype).at[:, :n_off].set(w3)
    b3p = jnp.zeros((1, n_pad), b3.dtype).at[:, :n_off].set(b3)

    # Optional bf16 matmul inputs (f32 accumulation preserved in the kernel).
    compute_dtype = jnp.bfloat16 if use_bf16 else jnp.float32
    g = gembedding.astype(compute_dtype)
    a = aembedding.astype(compute_dtype)
    w1g = w1g.astype(compute_dtype)
    w1a = w1a.astype(compute_dtype)
    w2c = w2.astype(compute_dtype)
    w3c = w3p.astype(compute_dtype)
    # biases stay f32: they are added to the f32 accumulator

    # Tile choice: a single grid step for small N (kills per-step overhead),
    # 512-row tiles for large N (keeps both v7x TensorCores busy via "parallel").
    if tile_m is None:
        tile_m = min(512, max(8, ((n + 7) // 8) * 8))
    n_rows = ((n + tile_m - 1) // tile_m) * tile_m
    if n_rows != n:
        g = jnp.pad(g, ((0, n_rows - n), (0, 0)))
        a = jnp.pad(a, ((0, n_rows - n), (0, 0)))

    grid = (n_rows // tile_m,)
    bytes_per = 2 if use_bf16 else 4
    cost = pl.CostEstimate(
        flops=2 * n_rows * (d_g * hidden + d_a * hidden
                            + hidden * hidden + hidden * n_pad),
        transcendentals=0,
        bytes_accessed=(n_rows * (d_g + d_a) * bytes_per          # inputs
                        + n_rows * n_pad * 4                      # output
                        + ((d_g + d_a) * hidden + hidden * hidden
                           + hidden * n_pad) * bytes_per          # weights
                        + (2 * hidden + n_pad) * 4),              # biases
    )

    out = pl.pallas_call(
        _mlp_kernel,
        out_shape=jax.ShapeDtypeStruct((n_rows, n_pad), jnp.float32),
        grid_spec=pltpu.PrefetchScalarGridSpec(
            num_scalar_prefetch=0,
            grid=grid,
            in_specs=[
                pl.BlockSpec((tile_m, d_g), lambda i: (i, 0)),      # g rows
                pl.BlockSpec((tile_m, d_a), lambda i: (i, 0)),      # a rows
                pl.BlockSpec((d_g, hidden), lambda i: (0, 0)),      # W1g (resident)
                pl.BlockSpec((d_a, hidden), lambda i: (0, 0)),      # W1a (resident)
                pl.BlockSpec((1, hidden), lambda i: (0, 0)),        # b1
                pl.BlockSpec((hidden, hidden), lambda i: (0, 0)),   # W2
                pl.BlockSpec((1, hidden), lambda i: (0, 0)),        # b2
                pl.BlockSpec((hidden, n_pad), lambda i: (0, 0)),    # W3 (padded)
                pl.BlockSpec((1, n_pad), lambda i: (0, 0)),         # b3 (padded)
            ],
            out_specs=pl.BlockSpec((tile_m, n_pad), lambda i: (i, 0)),
        ),
        compiler_params=pltpu.CompilerParams(
            dimension_semantics=("parallel",),
        ),
        cost_estimate=cost,
    )(g, a, w1g, w1a, b1, w2c, b2, w3c, b3p)

    # strip row padding and lane padding (layout plumbing only)
    return out[:n, :n_off]


# ------------------------- deterministic params ------------------------------
def init_params(key, d_in, hidden, n_offsets):
    """nn.Linear-style uniform(-1/sqrt(fan_in), 1/sqrt(fan_in)) init.
    Weights stored transposed: (in_features, out_features)."""
    ks = jax.random.split(key, 6)

    def lin(kw, kb, fin, fout):
        bound = 1.0 / math.sqrt(fin)
        w = jax.random.uniform(kw, (fin, fout), jnp.float32, -bound, bound)
        b = jax.random.uniform(kb, (1, fout), jnp.float32, -bound, bound)
        return w, b

    w1, b1 = lin(ks[0], ks[1], d_in, hidden)
    w2, b2 = lin(ks[2], ks[3], hidden, hidden)
    w3, b3 = lin(ks[4], ks[5], hidden, n_offsets)
    return (w1, b1, w2, b2, w3, b3)


def _reference(gembedding, aembedding, params):
    w1, b1, w2, b2, w3, b3 = params
    x = jnp.concatenate([gembedding, aembedding], axis=-1)
    h = jnp.maximum(x @ w1 + b1, 0.0)
    h = jnp.maximum(h @ w2 + b2, 0.0)
    return h @ w3 + b3


# ---------------------------------- main -------------------------------------
if __name__ == "__main__":
    # config (small, consistent with the module):
    transient_embedding_dim = 16
    uncertainty_embedding_dim = 16
    n_offsets = 10          # feat_in / output dim of the MLP
    hidden = 128            # fixed by the module
    N = 256                 # number of anchors/points (rows)

    key = jax.random.PRNGKey(0)
    kg, ka, kp = jax.random.split(key, 3)
    gembedding = jax.random.normal(kg, (N, transient_embedding_dim), jnp.float32)
    aembedding = jax.random.normal(ka, (N, uncertainty_embedding_dim), jnp.float32)

    params = init_params(kp, transient_embedding_dim + uncertainty_embedding_dim,
                         hidden, n_offsets)
    ref = _reference(gembedding, aembedding, params)

    # f32 path (single grid step: tile_m == N)
    out = uncertainty_mlp_forward(gembedding, aembedding, params)
    out = jax.block_until_ready(out)
    assert out.shape == (N, n_offsets)
    assert jnp.allclose(out, ref, atol=1e-4, rtol=1e-4), "f32 mismatch vs reference"

    # bf16 matmul-input path (v6e/v7x MXU fast path; f32 accumulation kept)
    out_bf16 = uncertainty_mlp_forward(gembedding, aembedding, params, use_bf16=True)
    out_bf16 = jax.block_until_ready(out_bf16)
    assert jnp.allclose(out_bf16, ref, atol=1e-1, rtol=1e-1), "bf16 mismatch vs reference"

    # ragged-N path (exercises row padding / cdiv grid — no divisibility assert)
    Nr = 100
    out_r = uncertainty_mlp_forward(gembedding[:Nr], aembedding[:Nr], params)
    out_r = jax.block_until_ready(out_r)
    assert out_r.shape == (Nr, n_offsets)
    assert jnp.allclose(out_r, ref[:Nr], atol=1e-4, rtol=1e-4), "ragged-N mismatch"

    print("KERNEL_OK")
</pallas_src>

<mosaic_0001>
module attributes {stable_mosaic.version = 11 : i64} {
  func.func @_mlp_kernel(%arg0: i32, %arg1: memref<256x16xf32, #tpu.memory_space<vmem>>, %arg2: memref<256x16xf32, #tpu.memory_space<vmem>>, %arg3: memref<16x128xf32, #tpu.memory_space<vmem>>, %arg4: memref<16x128xf32, #tpu.memory_space<vmem>>, %arg5: memref<1x128xf32, #tpu.memory_space<vmem>>, %arg6: memref<128x128xf32, #tpu.memory_space<vmem>>, %arg7: memref<1x128xf32, #tpu.memory_space<vmem>>, %arg8: memref<128x128xf32, #tpu.memory_space<vmem>>, %arg9: memref<1x128xf32, #tpu.memory_space<vmem>>, %arg10: memref<256x128xf32, #tpu.memory_space<vmem>>) attributes {dimension_semantics = [#tpu.dimension_semantics<parallel>], iteration_bounds = array<i64: 1>, scalar_prefetch = 0 : i64, scratch_operands = 0 : i64, tpu.core_type = #tpu.core_type<tc>, window_params = [{transform_indices = @transform_0, window_bounds = array<i64: 256, 16>}, {transform_indices = @transform_1, window_bounds = array<i64: 256, 16>}, {pipeline_mode = #tpu.pipeline_mode<synchronous>, transform_indices = @transform_2, window_bounds = array<i64: 16, 128>}, {pipeline_mode = #tpu.pipeline_mode<synchronous>, transform_indices = @transform_3, window_bounds = array<i64: 16, 128>}, {pipeline_mode = #tpu.pipeline_mode<synchronous>, transform_indices = @transform_4, window_bounds = array<i64: 1, 128>}, {pipeline_mode = #tpu.pipeline_mode<synchronous>, transform_indices = @transform_5, window_bounds = array<i64: 128, 128>}, {pipeline_mode = #tpu.pipeline_mode<synchronous>, transform_indices = @transform_6, window_bounds = array<i64: 1, 128>}, {pipeline_mode = #tpu.pipeline_mode<synchronous>, transform_indices = @transform_7, window_bounds = array<i64: 128, 128>}, {pipeline_mode = #tpu.pipeline_mode<synchronous>, transform_indices = @transform_8, window_bounds = array<i64: 1, 128>}, {transform_indices = @transform_9, window_bounds = array<i64: 256, 128>}]} {
    %c0 = arith.constant 0 : index
    %c0_0 = arith.constant 0 : index
    %0 = vector.load %arg1[%c0, %c0_0] : memref<256x16xf32, #tpu.memory_space<vmem>>, vector<256x16xf32>
    %c0_1 = arith.constant 0 : index
    %c0_2 = arith.constant 0 : index
    %1 = vector.load %arg3[%c0_1, %c0_2] : memref<16x128xf32, #tpu.memory_space<vmem>>, vector<16x128xf32>
    %cst = arith.constant dense<0.000000e+00> : vector<256x128xf32>
    %2 = tpu.matmul %0, %1, %cst {dimension_numbers = #tpu.dot_dimension_numbers<[1], [0], [0], [1], [0, 0, 1, 1], [], []>} : vector<256x16xf32>, vector<16x128xf32>, vector<256x128xf32> -> vector<256x128xf32>
    %c0_3 = arith.constant 0 : index
    %c0_4 = arith.constant 0 : index
    %3 = vector.load %arg2[%c0_3, %c0_4] : memref<256x16xf32, #tpu.memory_space<vmem>>, vector<256x16xf32>
    %c0_5 = arith.constant 0 : index
    %c0_6 = arith.constant 0 : index
    %4 = vector.load %arg4[%c0_5, %c0_6] : memref<16x128xf32, #tpu.memory_space<vmem>>, vector<16x128xf32>
    %cst_7 = arith.constant dense<0.000000e+00> : vector<256x128xf32>
    %5 = tpu.matmul %3, %4, %cst_7 {dimension_numbers = #tpu.dot_dimension_numbers<[1], [0], [0], [1], [0, 0, 1, 1], [], []>} : vector<256x16xf32>, vector<16x128xf32>, vector<256x128xf32> -> vector<256x128xf32>
    %6 = arith.addf %2, %5 : vector<256x128xf32>
    %c0_8 = arith.constant 0 : index
    %c0_9 = arith.constant 0 : index
    %7 = vector.load %arg5[%c0_8, %c0_9] : memref<1x128xf32, #tpu.memory_space<vmem>>, vector<1x128xf32>
    %8 = vector.broadcast %7 : vector<1x128xf32> to vector<256x128xf32>
    %9 = arith.addf %6, %8 : vector<256x128xf32>
    %cst_10 = arith.constant 0.000000e+00 : f32
    %10 = vector.broadcast %cst_10 : f32 to vector<256x128xf32>
    %11 = arith.maximumf %9, %10 : vector<256x128xf32>
    %c0_11 = arith.constant 0 : index
    %c0_12 = arith.constant 0 : index
    %12 = vector.load %arg6[%c0_11, %c0_12] : memref<128x128xf32, #tpu.memory_space<vmem>>, vector<128x128xf32>
    %cst_13 = arith.constant dense<0.000000e+00> : vector<256x128xf32>
    %13 = tpu.matmul %11, %12, %cst_13 {dimension_numbers = #tpu.dot_dimension_numbers<[1], [0], [0], [1], [0, 0, 1, 1], [], []>} : vector<256x128xf32>, vector<128x128xf32>, vector<256x128xf32> -> vector<256x128xf32>
    %c0_14 = arith.constant 0 : index
    %c0_15 = arith.constant 0 : index
    %14 = vector.load %arg7[%c0_14, %c0_15] : memref<1x128xf32, #tpu.memory_space<vmem>>, vector<1x128xf32>
    %15 = vector.broadcast %14 : vector<1x128xf32> to vector<256x128xf32>
    %16 = arith.addf %13, %15 : vector<256x128xf32>
    %cst_16 = arith.constant 0.000000e+00 : f32
    %17 = vector.broadcast %cst_16 : f32 to vector<256x128xf32>
    %18 = arith.maximumf %16, %17 : vector<256x128xf32>
    %c0_17 = arith.constant 0 : index
    %c0_18 = arith.constant 0 : index
    %19 = vector.load %arg8[%c0_17, %c0_18] : memref<128x128xf32, #tpu.memory_space<vmem>>, vector<128x128xf32>
    %cst_19 = arith.constant dense<0.000000e+00> : vector<256x128xf32>
    %20 = tpu.matmul %18, %19, %cst_19 {dimension_numbers = #tpu.dot_dimension_numbers<[1], [0], [0], [1], [0, 0, 1, 1], [], []>} : vector<256x128xf32>, vector<128x128xf32>, vector<256x128xf32> -> vector<256x128xf32>
    %c0_20 = arith.constant 0 : index
    %c0_21 = arith.constant 0 : index
    %21 = vector.load %arg9[%c0_20, %c0_21] : memref<1x128xf32, #tpu.memory_space<vmem>>, vector<1x128xf32>
    %22 = vector.broadcast %21 : vector<1x128xf32> to vector<256x128xf32>
    %23 = arith.addf %20, %22 : vector<256x128xf32>
    %c0_22 = arith.constant 0 : index
    %c0_23 = arith.constant 0 : index
    %24 = vector.load %arg10[%c0_22, %c0_23] : memref<256x128xf32, #tpu.memory_space<vmem>>, vector<256x128xf32>
    tpu.vector_store %arg10[%c0_22, %c0_23], %23 {strides = array<i32>} : memref<256x128xf32, #tpu.memory_space<vmem>>, vector<256x128xf32>,
    return
  }
  func.func @transform_0(%arg0: i32) -> (i32, i32) {
    %c0_i32 = arith.constant 0 : i32
    %c0_i32_0 = arith.constant 0 : i32
    return %arg0, %c0_i32 : i32, i32
  }
  func.func @transform_1(%arg0: i32) -> (i32, i32) {
    %c0_i32 = arith.constant 0 : i32
    %c0_i32_0 = arith.constant 0 : i32
    return %arg0, %c0_i32 : i32, i32
  }
  func.func @transform_2(%arg0: i32) -> (i32, i32) {
    %c0_i32 = arith.constant 0 : i32
    %c0_i32_0 = arith.constant 0 : i32
    %c0_i32_1 = arith.constant 0 : i32
    return %c0_i32, %c0_i32_0 : i32, i32
  }
  func.func @transform_3(%arg0: i32) -> (i32, i32) {
    %c0_i32 = arith.constant 0 : i32
    %c0_i32_0 = arith.constant 0 : i32
    %c0_i32_1 = arith.constant 0 : i32
    return %c0_i32, %c0_i32_0 : i32, i32
  }
  func.func @transform_4(%arg0: i32) -> (i32, i32) {
    %c0_i32 = arith.constant 0 : i32
    %c0_i32_0 = arith.constant 0 : i32
    %c0_i32_1 = arith.constant 0 : i32
    return %c0_i32, %c0_i32_0 : i32, i32
  }
  func.func @transform_5(%arg0: i32) -> (i32, i32) {
    %c0_i32 = arith.constant 0 : i32
    %c0_i32_0 = arith.constant 0 : i32
    %c0_i32_1 = arith.constant 0 : i32
    return %c0_i32, %c0_i32_0 : i32, i32
  }
  func.func @transform_6(%arg0: i32) -> (i32, i32) {
    %c0_i32 = arith.constant 0 : i32
    %c0_i32_0 = arith.constant 0 : i32
    %c0_i32_1 = arith.constant 0 : i32
    return %c0_i32, %c0_i32_0 : i32, i32
  }
  func.func @transform_7(%arg0: i32) -> (i32, i32) {
    %c0_i32 = arith.constant 0 : i32
    %c0_i32_0 = arith.constant 0 : i32
    %c0_i32_1 = arith.constant 0 : i32
    return %c0_i32, %c0_i32_0 : i32, i32
  }
  func.func @transform_8(%arg0: i32) -> (i32, i32) {
    %c0_i32 = arith.constant 0 : i32
    %c0_i32_0 = arith.constant 0 : i32
    %c0_i32_1 = arith.constant 0 : i32
    return %c0_i32, %c0_i32_0 : i32, i32
  }
  func.func @transform_9(%arg0: i32) -> (i32, i32) {
    %c0_i32 = arith.constant 0 : i32
    %c0_i32_0 = arith.constant 0 : i32
    return %arg0, %c0_i32 : i32, i32
  }
}

</mosaic_0001>

<bundles_post_ra>
// kernel: tpu_custom_call.1
= control target key start
LH: loop header
LB: loop body
LE: loop exit
PB: predicated region body
PF: predicated region fallthrough
CT: control target
= control target key end

     0   :  { %vm101_vm0 = vcmask 130048   ;;  %s2442_s0 = inlined_call_operand.vmem [shape: f32[256,16], index: 0, kind: input, shape index: {}]   ;;  %s2443_s1 = inlined_call_operand.vmem [shape: f32[256,16], index: 1, kind: input, shape index: {}]   ;;  %s2444_s2 = inlined_call_operand.vmem [shape: f32[16,128], index: 2, kind: input, shape index: {}]   ;;  %s2445_s3 = inlined_call_operand.vmem [shape: f32[16,128], index: 3, kind: input, shape index: {}]   ;;  %s2446_s4 = inlined_call_operand.vmem [shape: f32[1,128], index: 4, kind: input, shape index: {}]   ;;  %s2447_s5 = inlined_call_operand.vmem [shape: f32[128,128], index: 5, kind: input, shape index: {}]   ;;  %s2448_s6 = inlined_call_operand.vmem [shape: f32[1,128], index: 6, kind: input, shape index: {}]   ;;  %s2449_s7 = inlined_call_operand.vmem [shape: f32[128,128], index: 7, kind: input, shape index: {}]   ;;  %s2450_s8 = inlined_call_operand.vmem [shape: f32[1,128], index: 8, kind: input, shape index: {}]   ;;  %s2451_s9 = inlined_call_operand.hbm [shape: f32[256,128], index: 9, kind: output, shape index: {}]  }
   0x1   :  { %v100_v0 = vld [vmem:[%s2445_s3 + $0x8] sm:$0xff]  ;;  %v99_v2 = vld [vmem:[%s2445_s3] sm:$0xff]  ;;  %v69_v8 = vld [vmem:[%s2443_s1 + $0x10] sm:$0xff] }
   0x2   :  { %v66_v1 = vld [vmem:[%s2444_s2 + $0x8] sm:$0xff]  ;;  %1622 = vmatprep.subr.mxu0 %v100_v0  ;;  %v65_v3 = vld [vmem:[%s2444_s2] sm:$0xff]  ;;  %v35_v9 = vld [vmem:[%s2442_s0 + $0x10] sm:$0xff] }
   0x3   :  { %1674 = vmatprep.subr.mxu1 %v66_v1  ;;  %v67_v4 = vld [vmem:[%s2443_s1] sm:$0xff]  ;;  %1623 = vmatpush3.msra.mxu0 %v100_v0  ;;  %v68_v6 = vld [vmem:[%s2443_s1 + $0x8] sm:$0xff]  ;;  %v70_v10 = vld [vmem:[%s2443_s1 + $0x18] sm:$0xff] }
   0x4   :  { %1675 = vmatpush3.msra.mxu1 %v66_v1  ;;  %v33_v5 = vld [vmem:[%s2442_s0] sm:$0xff]  ;;  %1624 = vmatprep.subr.mxu0 %v99_v2  ;;  %v34_v7 = vld [vmem:[%s2442_s0 + $0x8] sm:$0xff]  ;;  %v36_v11 = vld [vmem:[%s2442_s0 + $0x18] sm:$0xff] }
   0x5   :  { %1676 = vmatprep.subr.mxu1 %v65_v3  ;;  %1625 = vmatpush3.msra.mxu0 %v99_v2  ;;  %v71_v12 = vld [vmem:[%s2443_s1 + $0x20] sm:$0xff]  ;;  %v72_v14 = vld [vmem:[%s2443_s1 + $0x28] sm:$0xff]  ;;  %v73_v16 = vld [vmem:[%s2443_s1 + $0x30] sm:$0xff] }
   0x6   :  { %1626 = vmatprep.mubr.msk.f32.mxu0 %vm101_vm0, %v67_v4  ;;  %1677 = vmatpush3.msra.mxu1 %v65_v3  ;;  %v37_v13 = vld [vmem:[%s2442_s0 + $0x20] sm:$0xff]  ;;  %v38_v15 = vld [vmem:[%s2442_s0 + $0x28] sm:$0xff]  ;;  %v39_v17 = vld [vmem:[%s2442_s0 + $0x30] sm:$0xff] }
   0x7   :  { %1678 = vmatprep.mubr.msk.f32.mxu1 %vm101_vm0, %v33_v5  ;;  %1627 = vmatmul.mubr.msk.f32.vlgmr.msra.gmra.mxu0 %vm101_vm0, %v68_v6  ;;  %v74_v18 = vld [vmem:[%s2443_s1 + $0x38] sm:$0xff]  ;;  %v75_v20 = vld [vmem:[%s2443_s1 + $0x40] sm:$0xff]  ;;  %v76_v22 = vld [vmem:[%s2443_s1 + $0x48] sm:$0xff] }
   0x8   :  { %1679 = vmatmul.mubr.msk.f32.vlgmr.msra.gmra.mxu1 %vm101_vm0, %v34_v7  ;;  %1629 = vmatprep.mubr.msk.f32.mxu0 %vm101_vm0, %v69_v8  ;;  %v40_v19 = vld [vmem:[%s2442_s0 + $0x38] sm:$0xff]  ;;  %v41_v21 = vld [vmem:[%s2442_s0 + $0x40] sm:$0xff]  ;;  %v42_v23 = vld [vmem:[%s2442_s0 + $0x48] sm:$0xff] }
   0x9   :  { %1681 = vmatprep.mubr.msk.f32.mxu1 %vm101_vm0, %v35_v9  ;;  %v77_v24 = vld [vmem:[%s2443_s1 + $0x50] sm:$0xff]  ;;  %v830_v26 = vld [vmem:[%s2447_s5 + $0x78] sm:$0xff]  ;;  %v79_v29 = vld [vmem:[%s2443_s1 + $0x60] sm:$0xff] }
   0xa   :  { %v43_v25 = vld [vmem:[%s2442_s0 + $0x50] sm:$0xff]  ;;  %v78_v27 = vld [vmem:[%s2443_s1 + $0x58] sm:$0xff]  ;;  %v45_v30 = vld [vmem:[%s2442_s0 + $0x60] sm:$0xff]  ;;  %1726 = vmatprep.subr.mxu0 %v830_v26 }
   0xb   :  { %1630 = vmatmul.mubr.msk.f32.gmra.mxu0 %vm101_vm0, %v70_v10  ;;  %v44_v28 = vld [vmem:[%s2442_s0 + $0x58] sm:$0xff]  ;;  %v829_v31 = vld [vmem:[%s2447_s5 + $0x70] sm:$0xff]  ;;  %v80_v32 = vld [vmem:[%s2443_s1 + $0x68] sm:$0xff] }
   0xc   :  { %1682 = vmatmul.mubr.msk.f32.gmra.mxu1 %vm101_vm0, %v36_v11  ;;  %1632 = vmatprep.mubr.msk.f32.mxu0 %vm101_vm0, %v71_v12  ;;  %v46_v33 = vld [vmem:[%s2442_s0 + $0x68] sm:$0xff] }
   0xd   :  { %1684 = vmatprep.mubr.msk.f32.mxu1 %vm101_vm0, %v37_v13  ;;  %1727 = vmatpush3.msra.mxu0 %v830_v26 }
   0xf   :  { %1633 = vmatmul.mubr.msk.f32.gmra.mxu0 %vm101_vm0, %v72_v14 }
  0x10   :  { %1685 = vmatmul.mubr.msk.f32.gmra.mxu1 %vm101_vm0, %v38_v15  ;;  %1635 = vmatprep.mubr.msk.f32.mxu0 %vm101_vm0, %v73_v16 }
  0x11   :  { %1687 = vmatprep.mubr.msk.f32.mxu1 %vm101_vm0, %v39_v17 }
  0x13   :  { %1636 = vmatmul.mubr.msk.f32.gmra.mxu0 %vm101_vm0, %v74_v18 }
  0x14   :  { %1688 = vmatmul.mubr.msk.f32.gmra.mxu1 %vm101_vm0, %v40_v19  ;;  %1638 = vmatprep.mubr.msk.f32.mxu0 %vm101_vm0, %v75_v20 }
  0x15   :  { %1690 = vmatprep.mubr.msk.f32.mxu1 %vm101_vm0, %v41_v21 }
  0x17   :  { %1639 = vmatmul.mubr.msk.f32.gmra.mxu0 %vm101_vm0, %v76_v22 }
  0x18   :  { %1691 = vmatmul.mubr.msk.f32.gmra.mxu1 %vm101_vm0, %v42_v23  ;;  %1641 = vmatprep.mubr.msk.f32.mxu0 %vm101_vm0, %v77_v24 }
  0x19   :  { %1693 = vmatprep.mubr.msk.f32.mxu1 %vm101_vm0, %v43_v25 }
  0x1b   :  { %1642 = vmatmul.mubr.msk.f32.gmra.mxu0 %vm101_vm0, %v78_v27 }
  0x1c   :  { %1694 = vmatmul.mubr.msk.f32.gmra.mxu1 %vm101_vm0, %v44_v28  ;;  %1644 = vmatprep.mubr.msk.f32.mxu0 %vm101_vm0, %v79_v29 }
  0x1d   :  { %1696 = vmatprep.mubr.msk.f32.mxu1 %vm101_vm0, %v45_v30 }
  0x1e   :  { %14 = vsyncpa [#allocation3], 0  ;;  %v81_v34 = vld [vmem:[%s2443_s1 + $0x70] sm:$0xff]  ;;  %1728 = vmatprep.subr.mxu0 %v829_v31  ;;  %v828_v36 = vld [vmem:[%s2447_s5 + $0x68] sm:$0xff] }
  0x1f   :  { %v47_v35 = vld [vmem:[%s2442_s0 + $0x70] sm:$0xff]  ;;  %1729 = vmatpush3.msra.mxu0 %v829_v31  ;;  %v82_v37 = vld [vmem:[%s2443_s1 + $0x78] sm:$0xff]  ;;  %v83_v39 = vld [vmem:[%s2443_s1 + $0x80] sm:$0xff] }
  0x20   :  { %1645 = vmatmul.mubr.msk.f32.gmra.mxu0 %vm101_vm0, %v80_v32  ;;  %1697 = vmatmul.mubr.msk.f32.gmra.mxu1 %vm101_vm0, %v46_v33  ;;  %v48_v38 = vld [vmem:[%s2442_s0 + $0x78] sm:$0xff]  ;;  %v49_v40 = vld [vmem:[%s2442_s0 + $0x80] sm:$0xff]  ;;  %v84_v42 = vld [vmem:[%s2443_s1 + $0x88] sm:$0xff] }
  0x21   :  { %1647 = vmatprep.mubr.msk.f32.mxu0 %vm101_vm0, %v81_v34  ;;  %1699 = vmatprep.mubr.msk.f32.mxu1 %vm101_vm0, %v47_v35  ;;  %v827_v41 = vld [vmem:[%s2447_s5 + $0x60] sm:$0xff]  ;;  %v50_v43 = vld [vmem:[%s2442_s0 + $0x88] sm:$0xff]  ;;  %v85_v44 = vld [vmem:[%s2443_s1 + $0x90] sm:$0xff] }
  0x22   :  { %1730 = vmatprep.subr.mxu0 %v828_v36  ;;  %v51_v45 = vld [vmem:[%s2442_s0 + $0x90] sm:$0xff]  ;;  %v826_v46 = vld [vmem:[%s2447_s5 + $0x58] sm:$0xff]  ;;  %v87_v49 = vld [vmem:[%s2443_s1 + $0xa0] sm:$0xff] }
  0x23   :  { %1731 = vmatpush3.msra.mxu0 %v828_v36  ;;  %v86_v47 = vld [vmem:[%s2443_s1 + $0x98] sm:$0xff]  ;;  %v53_v50 = vld [vmem:[%s2442_s0 + $0xa0] sm:$0xff]  ;;  %v825_v51 = vld [vmem:[%s2447_s5 + $0x50] sm:$0xff] }
  0x24   :  { %1648 = vmatmul.mubr.msk.f32.gmra.mxu0 %vm101_vm0, %v82_v37  ;;  %1700 = vmatmul.mubr.msk.f32.gmra.mxu1 %vm101_vm0, %v48_v38  ;;  %v52_v48 = vld [vmem:[%s2442_s0 + $0x98] sm:$0xff]  ;;  %v88_v52 = vld [vmem:[%s2443_s1 + $0xa8] sm:$0xff]  ;;  %v89_v54 = vld [vmem:[%s2443_s1 + $0xb0] sm:$0xff] }
  0x25   :  { %1650 = vmatprep.mubr.msk.f32.mxu0 %vm101_vm0, %v83_v39  ;;  %1702 = vmatprep.mubr.msk.f32.mxu1 %vm101_vm0, %v49_v40  ;;  %v54_v53 = vld [vmem:[%s2442_s0 + $0xa8] sm:$0xff]  ;;  %v55_v55 = vld [vmem:[%s2442_s0 + $0xb0] sm:$0xff]  ;;  %v90_v57 = vld [vmem:[%s2443_s1 + $0xb8] sm:$0xff] }
  0x26   :  { %1732 = vmatprep.subr.mxu0 %v827_v41  ;;  %v824_v56 = vld [vmem:[%s2447_s5 + $0x48] sm:$0xff]  ;;  %v56_v58 = vld [vmem:[%s2442_s0 + $0xb8] sm:$0xff]  ;;  %v91_v59 = vld [vmem:[%s2443_s1 + $0xc0] sm:$0xff] }
  0x27   :  { %1733 = vmatpush3.msra.mxu0 %v827_v41  ;;  %v57_v60 = vld [vmem:[%s2442_s0 + $0xc0] sm:$0xff]  ;;  %v92_v62 = vld [vmem:[%s2443_s1 + $0xc8] sm:$0xff]  ;;  %v93_v0 = vld [vmem:[%s2443_s1 + $0xd0] sm:$0xff] }
  0x28   :  { %1651 = vmatmul.mubr.msk.f32.gmra.mxu0 %vm101_vm0, %v84_v42  ;;  %1703 = vmatmul.mubr.msk.f32.gmra.mxu1 %vm101_vm0, %v50_v43  ;;  %v823_v61 = vld [vmem:[%s2447_s5 + $0x40] sm:$0xff]  ;;  %v58_v63 = vld [vmem:[%s2442_s0 + $0xc8] sm:$0xff]  ;;  %v59_v1 = vld [vmem:[%s2442_s0 + $0xd0] sm:$0xff] }
  0x29   :  { %1653 = vmatprep.mubr.msk.f32.mxu0 %vm101_vm0, %v85_v44  ;;  %1705 = vmatprep.mubr.msk.f32.mxu1 %vm101_vm0, %v51_v45  ;;  %v822_v2 = vld [vmem:[%s2447_s5 + $0x38] sm:$0xff]  ;;  %v95_v5 = vld [vmem:[%s2443_s1 + $0xe0] sm:$0xff]  ;;  %v821_v7 = vld [vmem:[%s2447_s5 + $0x30] sm:$0xff] }
  0x2a   :  { %1734 = vmatprep.subr.mxu0 %v826_v46  ;;  %v94_v3 = vld [vmem:[%s2443_s1 + $0xd8] sm:$0xff]  ;;  %v61_v6 = vld [vmem:[%s2442_s0 + $0xe0] sm:$0xff]  ;;  %v96_v8 = vld [vmem:[%s2443_s1 + $0xe8] sm:$0xff] }
  0x2b   :  { %1735 = vmatpush3.msra.mxu0 %v826_v46  ;;  %v60_v4 = vld [vmem:[%s2442_s0 + $0xd8] sm:$0xff]  ;;  %v62_v9 = vld [vmem:[%s2442_s0 + $0xe8] sm:$0xff]  ;;  %v97_v10 = vld [vmem:[%s2443_s1 + $0xf0] sm:$0xff] }
  0x2c   :  { %1654 = vmatmul.mubr.msk.f32.gmra.mxu0 %vm101_vm0, %v86_v47  ;;  %1706 = vmatmul.mubr.msk.f32.gmra.mxu1 %vm101_vm0, %v52_v48  ;;  %v63_v11 = vld [vmem:[%s2442_s0 + $0xf0] sm:$0xff]  ;;  %v820_v12 = vld [vmem:[%s2447_s5 + $0x28] sm:$0xff]  ;;  %v98_v13 = vld [vmem:[%s2443_s1 + $0xf8] sm:$0xff] }
  0x2d   :  { %1656 = vmatprep.mubr.msk.f32.mxu0 %vm101_vm0, %v87_v49  ;;  %1708 = vmatprep.mubr.msk.f32.mxu1 %vm101_vm0, %v53_v50  ;;  %v64_v14 = vld [vmem:[%s2442_s0 + $0xf8] sm:$0xff]  ;;  %v819_v15 = vld [vmem:[%s2447_s5 + $0x20] sm:$0xff]  ;;  %v817_v17 = vld [vmem:[%s2447_s5 + $0x10] sm:$0xff] }
  0x2e   :  { %1736 = vmatprep.subr.mxu0 %v825_v51  ;;  %v818_v16 = vld [vmem:[%s2447_s5 + $0x18] sm:$0xff]  ;;  %v816_v18 = vld [vmem:[%s2447_s5 + $0x8] sm:$0xff]  ;;  %v815_v19 = vld [vmem:[%s2447_s5] sm:$0xff] }
  0x2f   :  { %1737 = vmatpush3.msra.mxu0 %v825_v51  ;;  %v1110_v20 = vld [vmem:[%s2449_s7 + $0x78] sm:$0xff]  ;;  %v1109_v21 = vld [vmem:[%s2449_s7 + $0x70] sm:$0xff]  ;;  %v1108_v22 = vld [vmem:[%s2449_s7 + $0x68] sm:$0xff] }
  0x30   :  { %1657 = vmatmul.mubr.msk.f32.gmra.mxu0 %vm101_vm0, %v88_v52  ;;  %1709 = vmatmul.mubr.msk.f32.gmra.mxu1 %vm101_vm0, %v54_v53  ;;  %v1107_v23 = vld [vmem:[%s2449_s7 + $0x60] sm:$0xff]  ;;  %v1106_v24 = vld [vmem:[%s2449_s7 + $0x58] sm:$0xff]  ;;  %v1105_v25 = vld [vmem:[%s2449_s7 + $0x50] sm:$0xff] }
  0x31   :  { %1659 = vmatprep.mubr.msk.f32.mxu0 %vm101_vm0, %v89_v54  ;;  %1711 = vmatprep.mubr.msk.f32.mxu1 %vm101_vm0, %v55_v55  ;;  %v1104_v26 = vld [vmem:[%s2449_s7 + $0x48] sm:$0xff]  ;;  %v1103_v27 = vld [vmem:[%s2449_s7 + $0x40] sm:$0xff]  ;;  %v1102_v28 = vld [vmem:[%s2449_s7 + $0x38] sm:$0xff] }
  0x32   :  { %1738 = vmatprep.subr.mxu0 %v824_v56  ;;  %1806 = vmatprep.subr.mxu1 %v1110_v20  ;;  %v1101_v29 = vld [vmem:[%s2449_s7 + $0x30] sm:$0xff]  ;;  %v1100_v30 = vld [vmem:[%s2449_s7 + $0x28] sm:$0xff]  ;;  %v1099_v31 = vld [vmem:[%s2449_s7 + $0x20] sm:$0xff] }
  0x33   :  { %1739 = vmatpush3.msra.mxu0 %v824_v56  ;;  %1807 = vmatpush3.msra.mxu1 %v1110_v20  ;;  %v1098_v32 = vld [vmem:[%s2449_s7 + $0x18] sm:$0xff]  ;;  %v1097_v33 = vld [vmem:[%s2449_s7 + $0x10] sm:$0xff]  ;;  %v1096_v34 = vld [vmem:[%s2449_s7 + $0x8] sm:$0xff] }
  0x34   :  { %1660 = vmatmul.mubr.msk.f32.gmra.mxu0 %vm101_vm0, %v90_v57  ;;  %1712 = vmatmul.mubr.msk.f32.gmra.mxu1 %vm101_vm0, %v56_v58  ;;  %v2328_v38 = vld [vmem:[%s2446_s4] ss:$0 sm:$0xff] }
  0x35   :  { %1662 = vmatprep.mubr.msk.f32.mxu0 %vm101_vm0, %v91_v59  ;;  %1714 = vmatprep.mubr.msk.f32.mxu1 %vm101_vm0, %v57_v60 }
  0x36   :  { %1740 = vmatprep.subr.mxu0 %v823_v61  ;;  %1808 = vmatprep.subr.mxu1 %v1109_v21 }
  0x37   :  { %1741 = vmatpush3.msra.mxu0 %v823_v61  ;;  %1809 = vmatpush3.msra.mxu1 %v1109_v21 }
  0x38   :  { %1663 = vmatmul.mubr.msk.f32.gmra.mxu0 %vm101_vm0, %v92_v62  ;;  %1715 = vmatmul.mubr.msk.f32.gmra.mxu1 %vm101_vm0, %v58_v63 }
  0x39   :  { %1665 = vmatprep.mubr.msk.f32.mxu0 %vm101_vm0, %v93_v0  ;;  %1717 = vmatprep.mubr.msk.f32.mxu1 %vm101_vm0, %v59_v1 }
  0x3a   :  { %1742 = vmatprep.subr.mxu0 %v822_v2  ;;  %1810 = vmatprep.subr.mxu1 %v1108_v22 }
  0x3b   :  { %1743 = vmatpush3.msra.mxu0 %v822_v2  ;;  %1811 = vmatpush3.msra.mxu1 %v1108_v22 }
  0x3c   :  { %1666 = vmatmul.mubr.msk.f32.gmra.mxu0 %vm101_vm0, %v94_v3  ;;  %1718 = vmatmul.mubr.msk.f32.gmra.mxu1 %vm101_vm0, %v60_v4 }
  0x3d   :  { %1668 = vmatprep.mubr.msk.f32.mxu0 %vm101_vm0, %v95_v5  ;;  %1720 = vmatprep.mubr.msk.f32.mxu1 %vm101_vm0, %v61_v6 }
  0x3e   :  { %1744 = vmatprep.subr.mxu0 %v821_v7  ;;  %1812 = vmatprep.subr.mxu1 %v1107_v23 }
  0x3f   :  { %1745 = vmatpush3.msra.mxu0 %v821_v7  ;;  %1813 = vmatpush3.msra.mxu1 %v1107_v23 }
  0x40   :  { %1669 = vmatmul.mubr.msk.f32.gmra.mxu0 %vm101_vm0, %v96_v8  ;;  %1721 = vmatmul.mubr.msk.f32.gmra.mxu1 %vm101_vm0, %v62_v9 }
  0x41   :  { %1671 = vmatprep.mubr.msk.f32.mxu0 %vm101_vm0, %v97_v10  ;;  %1723 = vmatprep.mubr.msk.f32.mxu1 %vm101_vm0, %v63_v11 }
  0x42   :  { %1746 = vmatprep.subr.mxu0 %v820_v12  ;;  %1814 = vmatprep.subr.mxu1 %v1106_v24 }
  0x43   :  { %1747 = vmatpush3.msra.mxu0 %v820_v12  ;;  %1815 = vmatpush3.msra.mxu1 %v1106_v24 }
  0x44   :  { %1672 = vmatmul.mubr.msk.f32.gmra.mxu0 %vm101_vm0, %v98_v13  ;;  %1724 = vmatmul.mubr.msk.f32.gmra.mxu1 %vm101_vm0, %v64_v14 }
  0x45   :  { %1748 = vmatprep.subr.mxu0 %v819_v15  ;;  %1816 = vmatprep.subr.mxu1 %v1105_v25 }
  0x46   :  { %1749 = vmatpush3.msra.mxu0 %v819_v15  ;;  %1817 = vmatpush3.msra.mxu1 %v1105_v25 }
  0x47   :  { %1750 = vmatprep.subr.mxu0 %v818_v16  ;;  %1818 = vmatprep.subr.mxu1 %v1104_v26 }
  0x48   :  { %1751 = vmatpush3.msra.mxu0 %v818_v16  ;;  %1819 = vmatpush3.msra.mxu1 %v1104_v26 }
  0x49   :  { %1752 = vmatprep.subr.mxu0 %v817_v17  ;;  %1820 = vmatprep.subr.mxu1 %v1103_v27 }
  0x4a   :  { %1753 = vmatpush3.msra.mxu0 %v817_v17  ;;  %1821 = vmatpush3.msra.mxu1 %v1103_v27 }
  0x4b   :  { %1754 = vmatprep.subr.mxu0 %v816_v18  ;;  %1822 = vmatprep.subr.mxu1 %v1102_v28 }
  0x4c   :  { %1755 = vmatpush3.msra.mxu0 %v816_v18  ;;  %1823 = vmatpush3.msra.mxu1 %v1102_v28 }
  0x4d   :  { %1756 = vmatprep.subr.mxu0 %v815_v19  ;;  %1824 = vmatprep.subr.mxu1 %v1101_v29 }
  0x4e   :  { %1757 = vmatpush3.msra.mxu0 %v815_v19  ;;  %1825 = vmatpush3.msra.mxu1 %v1101_v29 }
  0x4f   :  { %1826 = vmatprep.subr.mxu1 %v1100_v30 }
  0x50   :  { %1827 = vmatpush3.msra.mxu1 %v1100_v30 }
  0x51   :  { %1828 = vmatprep.subr.mxu1 %v1099_v31 }
  0x52   :  { %1829 = vmatpush3.msra.mxu1 %v1099_v31 }
  0x53   :  { %1830 = vmatprep.subr.mxu1 %v1098_v32 }
  0x54   :  { %1831 = vmatpush3.msra.mxu1 %v1098_v32 }
  0x55   :  { %1832 = vmatprep.subr.mxu1 %v1097_v33 }
  0x56   :  { %1833 = vmatpush3.msra.mxu1 %v1097_v33 }
  0x57   :  { %1834 = vmatprep.subr.mxu1 %v1096_v34 }
  0x58   :  { %1835 = vmatpush3.msra.mxu1 %v1096_v34 }
  0xc7   :  { %v1628_v35 = vpop.f32.mrf.mxu0 }
  0xc8   :  { %v1680_v36 = vpop.f32.mrf.mxu1 }
  0xc9   :  { %v591_v37 = vadd.f32 %v1680_v36, %v1628_v35  ;;  %v264_v39 = vpop.f32.mrf.mxu0 }
  0xca   :  { %v585_v40 = vpop.f32.mrf.mxu1 }
  0xcb   :  { %v586_v41 = vadd.f32 %v585_v40, %v264_v39  ;;  %v752_v42 = vadd.f32 %v2328_v38, %v591_v37  ;;  %v1631_v43 = vpop.f32.mrf.mxu0 }
  0xcc   :  { %v1683_v44 = vpop.f32.mrf.mxu1 }
  0xcd   :  { %v751_v45 = vadd.f32 %v2328_v38, %v586_v41  ;;  %v601_v46 = vadd.f32 %v1683_v44, %v1631_v43  ;;  %v274_v47 = vpop.f32.mrf.mxu0  ;;  %v784_v51 = vmax.f32 %v752_v42, 0.0 }
  0xce   :  { %v595_v48 = vpop.f32.mrf.mxu1 }
  0xcf   :  { %v783_v49 = vmax.f32 %v751_v45, 0.0  ;;  %v596_v50 = vadd.f32 %v595_v48, %v274_v47  ;;  %v754_v52 = vadd.f32 %v2328_v38, %v601_v46  ;;  %v1634_v53 = vpop.f32.mrf.mxu0 }
  0xd0   :  { %v1686_v54 = vpop.f32.mrf.mxu1 }
  0xd1   :  { %v753_v55 = vadd.f32 %v2328_v38, %v596_v50  ;;  %v611_v56 = vadd.f32 %v1686_v54, %v1634_v53  ;;  %1758 = vmatprep.mubr.f32.mxu0 %v783_v49  ;;  %v284_v57 = vpop.f32.mrf.mxu0  ;;  %v786_v61 = vmax.f32 %v754_v52, 0.0 }
  0xd2   :  { %v605_v58 = vpop.f32.mrf.mxu1  ;;  %1759 = vmatmul.mubr.f32.vlgmr.msra.gmra.mxu0 %v784_v51 }
  0xd3   :  { %v785_v59 = vmax.f32 %v753_v55, 0.0  ;;  %v606_v60 = vadd.f32 %v605_v58, %v284_v57  ;;  %v756_v62 = vadd.f32 %v2328_v38, %v611_v56  ;;  %v1637_v63 = vpop.f32.mrf.mxu0 }
  0xd4   :  { %v1689_v0 = vpop.f32.mrf.mxu1 }
  0xd5   :  { %v755_v1 = vadd.f32 %v2328_v38, %v606_v60  ;;  %v621_v2 = vadd.f32 %v1689_v0, %v1637_v63  ;;  %1761 = vmatprep.mubr.f32.mxu0 %v785_v59  ;;  %v294_v3 = vpop.f32.mrf.mxu0  ;;  %v788_v7 = vmax.f32 %v756_v62, 0.0 }
  0xd6   :  { %v615_v4 = vpop.f32.mrf.mxu1  ;;  %1762 = vmatmul.mubr.f32.gmra.mxu0 %v786_v61 }
  0xd7   :  { %v787_v5 = vmax.f32 %v755_v1, 0.0  ;;  %v616_v6 = vadd.f32 %v615_v4, %v294_v3  ;;  %v758_v8 = vadd.f32 %v2328_v38, %v621_v2  ;;  %v1640_v9 = vpop.f32.mrf.mxu0 }
  0xd8   :  { %v1692_v10 = vpop.f32.mrf.mxu1 }
  0xd9   :  { %v757_v11 = vadd.f32 %v2328_v38, %v616_v6  ;;  %v631_v12 = vadd.f32 %v1692_v10, %v1640_v9  ;;  %1764 = vmatprep.mubr.f32.mxu0 %v787_v5  ;;  %v304_v13 = vpop.f32.mrf.mxu0  ;;  %v790_v17 = vmax.f32 %v758_v8, 0.0 }
  0xda   :  { %v625_v14 = vpop.f32.mrf.mxu1  ;;  %1765 = vmatmul.mubr.f32.gmra.mxu0 %v788_v7 }
  0xdb   :  { %v789_v15 = vmax.f32 %v757_v11, 0.0  ;;  %v626_v16 = vadd.f32 %v625_v14, %v304_v13  ;;  %v760_v18 = vadd.f32 %v2328_v38, %v631_v12  ;;  %v1643_v19 = vpop.f32.mrf.mxu0 }
  0xdc   :  { %v1695_v20 = vpop.f32.mrf.mxu1 }
  0xdd   :  { %v759_v21 = vadd.f32 %v2328_v38, %v626_v16  ;;  %v641_v22 = vadd.f32 %v1695_v20, %v1643_v19  ;;  %1767 = vmatprep.mubr.f32.mxu0 %v789_v15  ;;  %v314_v23 = vpop.f32.mrf.mxu0  ;;  %v792_v27 = vmax.f32 %v760_v18, 0.0 }
  0xde   :  { %v635_v24 = vpop.f32.mrf.mxu1  ;;  %1768 = vmatmul.mubr.f32.gmra.mxu0 %v790_v17 }
  0xdf   :  { %v791_v25 = vmax.f32 %v759_v21, 0.0  ;;  %v636_v26 = vadd.f32 %v635_v24, %v314_v23  ;;  %v762_v28 = vadd.f32 %v2328_v38, %v641_v22 }
  0xe0   :  { %v1646_v29 = vpop.f32.mrf.mxu0  ;;  %v1698_v30 = vpop.f32.mrf.mxu1 }
  0xe1   :  { %v761_v31 = vadd.f32 %v2328_v38, %v636_v26  ;;  %v651_v32 = vadd.f32 %v1698_v30, %v1646_v29  ;;  %1770 = vmatprep.mubr.f32.mxu0 %v791_v25  ;;  %v794_v37 = vmax.f32 %v762_v28, 0.0 }
  0xe2   :  { %v324_v33 = vpop.f32.mrf.mxu0  ;;  %v645_v34 = vpop.f32.mrf.mxu1  ;;  %1771 = vmatmul.mubr.f32.gmra.mxu0 %v792_v27 }
  0xe3   :  { %v793_v35 = vmax.f32 %v761_v31, 0.0  ;;  %v646_v36 = vadd.f32 %v645_v34, %v324_v33  ;;  %v764_v39 = vadd.f32 %v2328_v38, %v651_v32 }
  0xe4   :  { %v1649_v40 = vpop.f32.mrf.mxu0  ;;  %v1701_v41 = vpop.f32.mrf.mxu1 }
  0xe5   :  { %v763_v42 = vadd.f32 %v2328_v38, %v646_v36  ;;  %v661_v43 = vadd.f32 %v1701_v41, %v1649_v40  ;;  %1773 = vmatprep.mubr.f32.mxu0 %v793_v35  ;;  %v796_v48 = vmax.f32 %v764_v39, 0.0 }
  0xe6   :  { %v334_v44 = vpop.f32.mrf.mxu0  ;;  %v655_v45 = vpop.f32.mrf.mxu1  ;;  %1774 = vmatmul.mubr.f32.gmra.mxu0 %v794_v37 }
  0xe7   :  { %v795_v46 = vmax.f32 %v763_v42, 0.0  ;;  %v656_v47 = vadd.f32 %v655_v45, %v334_v44  ;;  %v766_v49 = vadd.f32 %v2328_v38, %v661_v43 }
  0xe8   :  { %v1652_v50 = vpop.f32.mrf.mxu0  ;;  %v1704_v51 = vpop.f32.mrf.mxu1 }
  0xe9   :  { %v765_v52 = vadd.f32 %v2328_v38, %v656_v47  ;;  %v671_v53 = vadd.f32 %v1704_v51, %v1652_v50  ;;  %1776 = vmatprep.mubr.f32.mxu0 %v795_v46  ;;  %v798_v58 = vmax.f32 %v766_v49, 0.0 }
  0xea   :  { %v344_v54 = vpop.f32.mrf.mxu0  ;;  %v665_v55 = vpop.f32.mrf.mxu1  ;;  %1777 = vmatmul.mubr.f32.gmra.mxu0 %v796_v48 }
  0xeb   :  { %v797_v56 = vmax.f32 %v765_v52, 0.0  ;;  %v666_v57 = vadd.f32 %v665_v55, %v344_v54  ;;  %v768_v59 = vadd.f32 %v2328_v38, %v671_v53 }
  0xec   :  { %v1655_v60 = vpop.f32.mrf.mxu0  ;;  %v1707_v61 = vpop.f32.mrf.mxu1 }
  0xed   :  { %v767_v62 = vadd.f32 %v2328_v38, %v666_v57  ;;  %v681_v63 = vadd.f32 %v1707_v61, %v1655_v60  ;;  %1779 = vmatprep.mubr.f32.mxu0 %v797_v56  ;;  %v800_v4 = vmax.f32 %v768_v59, 0.0 }
  0xee   :  { %v354_v0 = vpop.f32.mrf.mxu0  ;;  %v675_v1 = vpop.f32.mrf.mxu1  ;;  %1780 = vmatmul.mubr.f32.gmra.mxu0 %v798_v58 }
  0xef   :  { %v799_v2 = vmax.f32 %v767_v62, 0.0  ;;  %v676_v3 = vadd.f32 %v675_v1, %v354_v0  ;;  %v770_v5 = vadd.f32 %v2328_v38, %v681_v63 }
  0xf0   :  { %v1658_v6 = vpop.f32.mrf.mxu0  ;;  %v1710_v7 = vpop.f32.mrf.mxu1 }
  0xf1   :  { %v769_v8 = vadd.f32 %v2328_v38, %v676_v3  ;;  %v691_v9 = vadd.f32 %v1710_v7, %v1658_v6  ;;  %1782 = vmatprep.mubr.f32.mxu0 %v799_v2  ;;  %v802_v14 = vmax.f32 %v770_v5, 0.0  ;;  %v1095_v6 = vld [vmem:[%s2449_s7] sm:$0xff] }
  0xf2   :  { %v364_v10 = vpop.f32.mrf.mxu0  ;;  %v685_v11 = vpop.f32.mrf.mxu1  ;;  %1783 = vmatmul.mubr.f32.gmra.mxu0 %v800_v4  ;;  %1836 = vmatprep.subr.mxu1 %v1095_v6  ;;  %v2368_v7 = vld [vmem:[%s2448_s6] ss:$0 sm:$0xff] }
  0xf3   :  { %v801_v12 = vmax.f32 %v769_v8, 0.0  ;;  %v686_v13 = vadd.f32 %v685_v11, %v364_v10  ;;  %v772_v15 = vadd.f32 %v2328_v38, %v691_v9  ;;  %1837 = vmatpush3.msra.mxu1 %v1095_v6 }
  0xf4   :  { %v1661_v16 = vpop.f32.mrf.mxu0  ;;  %v1713_v17 = vpop.f32.mrf.mxu1 }
  0xf5   :  { %v771_v18 = vadd.f32 %v2328_v38, %v686_v13  ;;  %v701_v19 = vadd.f32 %v1713_v17, %v1661_v16  ;;  %1785 = vmatprep.mubr.f32.mxu0 %v801_v12  ;;  %v804_v24 = vmax.f32 %v772_v15, 0.0 }
  0xf6   :  { %v374_v20 = vpop.f32.mrf.mxu0  ;;  %v695_v21 = vpop.f32.mrf.mxu1  ;;  %1786 = vmatmul.mubr.f32.gmra.mxu0 %v802_v14 }
  0xf7   :  { %v803_v22 = vmax.f32 %v771_v18, 0.0  ;;  %v696_v23 = vadd.f32 %v695_v21, %v374_v20  ;;  %v774_v25 = vadd.f32 %v2328_v38, %v701_v19 }
  0xf8   :  { %v1664_v26 = vpop.f32.mrf.mxu0  ;;  %v1716_v27 = vpop.f32.mrf.mxu1 }
  0xf9   :  { %v773_v28 = vadd.f32 %v2328_v38, %v696_v23  ;;  %v711_v29 = vadd.f32 %v1716_v27, %v1664_v26  ;;  %1788 = vmatprep.mubr.f32.mxu0 %v803_v22  ;;  %v806_v34 = vmax.f32 %v774_v25, 0.0 }
  0xfa   :  { %v384_v30 = vpop.f32.mrf.mxu0  ;;  %v705_v31 = vpop.f32.mrf.mxu1  ;;  %1789 = vmatmul.mubr.f32.gmra.mxu0 %v804_v24 }
  0xfb   :  { %v805_v32 = vmax.f32 %v773_v28, 0.0  ;;  %v706_v33 = vadd.f32 %v705_v31, %v384_v30  ;;  %v776_v35 = vadd.f32 %v2328_v38, %v711_v29 }
  0xfc   :  { %v1667_v36 = vpop.f32.mrf.mxu0  ;;  %v1719_v37 = vpop.f32.mrf.mxu1 }
  0xfd   :  { %v775_v39 = vadd.f32 %v2328_v38, %v706_v33  ;;  %v721_v40 = vadd.f32 %v1719_v37, %v1667_v36  ;;  %1791 = vmatprep.mubr.f32.mxu0 %v805_v32  ;;  %v808_v45 = vmax.f32 %v776_v35, 0.0 }
  0xfe   :  { %v394_v41 = vpop.f32.mrf.mxu0  ;;  %v715_v42 = vpop.f32.mrf.mxu1  ;;  %1792 = vmatmul.mubr.f32.gmra.mxu0 %v806_v34 }
  0xff   :  { %v807_v43 = vmax.f32 %v775_v39, 0.0  ;;  %v716_v44 = vadd.f32 %v715_v42, %v394_v41  ;;  %v778_v46 = vadd.f32 %v2328_v38, %v721_v40 }
 0x100   :  { %v1670_v47 = vpop.f32.mrf.mxu0  ;;  %v1722_v48 = vpop.f32.mrf.mxu1 }
 0x101   :  { %v777_v49 = vadd.f32 %v2328_v38, %v716_v44  ;;  %v731_v50 = vadd.f32 %v1722_v48, %v1670_v47  ;;  %1794 = vmatprep.mubr.f32.mxu0 %v807_v43  ;;  %v810_v55 = vmax.f32 %v778_v46, 0.0 }
 0x102   :  { %v404_v51 = vpop.f32.mrf.mxu0  ;;  %v725_v52 = vpop.f32.mrf.mxu1  ;;  %1795 = vmatmul.mubr.f32.gmra.mxu0 %v808_v45 }
 0x103   :  { %v809_v53 = vmax.f32 %v777_v49, 0.0  ;;  %v726_v54 = vadd.f32 %v725_v52, %v404_v51  ;;  %v780_v56 = vadd.f32 %v2328_v38, %v731_v50 }
 0x104   :  { %v1673_v57 = vpop.f32.mrf.mxu0  ;;  %v1725_v58 = vpop.f32.mrf.mxu1 }
 0x105   :  { %v779_v59 = vadd.f32 %v2328_v38, %v726_v54  ;;  %v741_v60 = vadd.f32 %v1725_v58, %v1673_v57  ;;  %1797 = vmatprep.mubr.f32.mxu0 %v809_v53  ;;  %v812_v1 = vmax.f32 %v780_v56, 0.0 }
 0x106   :  { %v414_v61 = vpop.f32.mrf.mxu0  ;;  %v735_v62 = vpop.f32.mrf.mxu1  ;;  %1798 = vmatmul.mubr.f32.gmra.mxu0 %v810_v55 }
 0x107   :  { %v811_v63 = vmax.f32 %v779_v59, 0.0  ;;  %v736_v0 = vadd.f32 %v735_v62, %v414_v61  ;;  %v782_v2 = vadd.f32 %v2328_v38, %v741_v60 }
 0x109   :  { %v781_v3 = vadd.f32 %v2328_v38, %v736_v0  ;;  %1800 = vmatprep.mubr.f32.mxu0 %v811_v63  ;;  %v814_v5 = vmax.f32 %v782_v2, 0.0 }
 0x10a   :  { %1801 = vmatmul.mubr.f32.gmra.mxu0 %v812_v1 }
 0x10b   :  { %v813_v4 = vmax.f32 %v781_v3, 0.0 }
 0x10d   :  { %1803 = vmatprep.mubr.f32.mxu0 %v813_v4 }
 0x10e   :  { %1804 = vmatmul.mubr.f32.gmra.mxu0 %v814_v5 }
 0x192   :  { %v1760_v8 = vpop.f32.mrf.mxu0 }
 0x193   :  { %v910_v38 = vadd.f32 %v1760_v8, %v2368_v7 }
 0x194   :  { %v904_v9 = vpop.f32.mrf.mxu0 }
 0x195   :  { %v905_v10 = vadd.f32 %v2368_v7, %v904_v9  ;;  %v1064_v13 = vmax.f32 %v910_v38, 0.0 }
 0x196   :  { %v1763_v11 = vpop.f32.mrf.mxu0 }
 0x197   :  { %v1063_v12 = vmax.f32 %v905_v10, 0.0  ;;  %v920_v14 = vadd.f32 %v1763_v11, %v2368_v7 }
 0x198   :  { %v914_v15 = vpop.f32.mrf.mxu0 }
 0x199   :  { %v915_v16 = vadd.f32 %v2368_v7, %v914_v15  ;;  %1838 = vmatprep.mubr.f32.mxu1 %v1063_v12  ;;  %v1066_v19 = vmax.f32 %v920_v14, 0.0 }
 0x19a   :  { %v1766_v17 = vpop.f32.mrf.mxu0  ;;  %1839 = vmatmul.mubr.f32.vlgmr.msra.gmra.mxu1 %v1064_v13 }
 0x19b   :  { %v1065_v18 = vmax.f32 %v915_v16, 0.0  ;;  %v930_v20 = vadd.f32 %v1766_v17, %v2368_v7 }
 0x19c   :  { %v924_v21 = vpop.f32.mrf.mxu0 }
 0x19d   :  { %v925_v22 = vadd.f32 %v2368_v7, %v924_v21  ;;  %1841 = vmatprep.mubr.f32.mxu1 %v1065_v18  ;;  %v1068_v25 = vmax.f32 %v930_v20, 0.0 }
 0x19e   :  { %v1769_v23 = vpop.f32.mrf.mxu0  ;;  %1842 = vmatmul.mubr.f32.gmra.mxu1 %v1066_v19 }
 0x19f   :  { %v1067_v24 = vmax.f32 %v925_v22, 0.0  ;;  %v940_v26 = vadd.f32 %v1769_v23, %v2368_v7 }
 0x1a0   :  { %v934_v27 = vpop.f32.mrf.mxu0 }
 0x1a1   :  { %v935_v28 = vadd.f32 %v2368_v7, %v934_v27  ;;  %1844 = vmatprep.mubr.f32.mxu1 %v1067_v24  ;;  %v1070_v31 = vmax.f32 %v940_v26, 0.0 }
 0x1a2   :  { %v1772_v29 = vpop.f32.mrf.mxu0  ;;  %1845 = vmatmul.mubr.f32.gmra.mxu1 %v1068_v25 }
 0x1a3   :  { %v1069_v30 = vmax.f32 %v935_v28, 0.0  ;;  %v950_v32 = vadd.f32 %v1772_v29, %v2368_v7 }
 0x1a4   :  { %v944_v33 = vpop.f32.mrf.mxu0 }
 0x1a5   :  { %v945_v34 = vadd.f32 %v2368_v7, %v944_v33  ;;  %1847 = vmatprep.mubr.f32.mxu1 %v1069_v30  ;;  %v1072_v37 = vmax.f32 %v950_v32, 0.0 }
 0x1a6   :  { %v1775_v35 = vpop.f32.mrf.mxu0  ;;  %1848 = vmatmul.mubr.f32.gmra.mxu1 %v1070_v31 }
 0x1a7   :  { %v1071_v36 = vmax.f32 %v945_v34, 0.0  ;;  %v960_v39 = vadd.f32 %v1775_v35, %v2368_v7 }
 0x1a8   :  { %v954_v40 = vpop.f32.mrf.mxu0 }
 0x1a9   :  { %v955_v41 = vadd.f32 %v2368_v7, %v954_v40  ;;  %1850 = vmatprep.mubr.f32.mxu1 %v1071_v36  ;;  %v1074_v44 = vmax.f32 %v960_v39, 0.0 }
 0x1aa   :  { %v1778_v42 = vpop.f32.mrf.mxu0  ;;  %1851 = vmatmul.mubr.f32.gmra.mxu1 %v1072_v37 }
 0x1ab   :  { %v1073_v43 = vmax.f32 %v955_v41, 0.0  ;;  %v970_v45 = vadd.f32 %v1778_v42, %v2368_v7  ;;  %v2405_v41 = vld [vmem:[%s2450_s8] ss:$0 sm:$0xff]  ;;  %s1911_s8 = smov [#allocation2]  }
 0x1ac   :  { %v964_v46 = vpop.f32.mrf.mxu0  ;;  %s1380_s21 = sshll.u32 %s1911_s8, 4  ;;  %s1381_s21 = int_to_ptr.vmem [resolvable:$true] %s1380_s21 }
 0x1ad   :  { %v965_v47 = vadd.f32 %v2368_v7, %v964_v46  ;;  %1853 = vmatprep.mubr.f32.mxu1 %v1073_v43  ;;  %v1076_v50 = vmax.f32 %v970_v45, 0.0  ;;  %s1889_s22 = scalar_lea.vmem %s1381_s21, 4096  ;;  %p1894_p1 = scmp.lt.s32.totalorder %s1381_s21, %s1381_s21 }
 0x1ae   :  { %v1781_v48 = vpop.f32.mrf.mxu0  ;;  %1854 = vmatmul.mubr.f32.gmra.mxu1 %v1074_v44  ;;  %p1890_p0 = scmp.ne.s32.totalorder %s1381_s21, %s1889_s22  ;;  %p1895_p2 = scmp.lt.s32.totalorder %s1889_s22, %s1889_s22 }
 0x1af   :  { %v1075_v49 = vmax.f32 %v965_v47, 0.0  ;;  %v980_v51 = vadd.f32 %v1781_v48, %v2368_v7 }
 0x1b0   :  { %v974_v52 = vpop.f32.mrf.mxu0  ;;  %p1896_p3 = por %p1895_p2, %p1894_p1 }
 0x1b1   :  { %v975_v53 = vadd.f32 %v2368_v7, %v974_v52  ;;  %1856 = vmatprep.mubr.f32.mxu1 %v1075_v49  ;;  %v1078_v56 = vmax.f32 %v980_v51, 0.0 }
 0x1b2   :  { %v1784_v54 = vpop.f32.mrf.mxu0  ;;  %1857 = vmatmul.mubr.f32.gmra.mxu1 %v1076_v50  ;;  %p1897_p4 = pnand %p1896_p3, %p1890_p0 }
 0x1b3   :  { %v1077_v55 = vmax.f32 %v975_v53, 0.0  ;;  %v990_v57 = vadd.f32 %v1784_v54, %v2368_v7 }
 0x1b4   :  { %v984_v58 = vpop.f32.mrf.mxu0 }
 0x1b5   :  { %v985_v59 = vadd.f32 %v2368_v7, %v984_v58  ;;  %1859 = vmatprep.mubr.f32.mxu1 %v1077_v55  ;;  %v1080_v62 = vmax.f32 %v990_v57, 0.0 }
 0x1b6   :  { %v1787_v60 = vpop.f32.mrf.mxu0  ;;  %1860 = vmatmul.mubr.f32.gmra.mxu1 %v1078_v56 }
 0x1b7   :  { %v1079_v61 = vmax.f32 %v985_v59, 0.0  ;;  %v1000_v63 = vadd.f32 %v1787_v60, %v2368_v7 }
 0x1b8   :  { %v994_v0 = vpop.f32.mrf.mxu0 }
 0x1b9   :  { %v995_v1 = vadd.f32 %v2368_v7, %v994_v0  ;;  %1862 = vmatprep.mubr.f32.mxu1 %v1079_v61  ;;  %v1082_v4 = vmax.f32 %v1000_v63, 0.0 }
 0x1ba   :  { %v1790_v2 = vpop.f32.mrf.mxu0  ;;  %1863 = vmatmul.mubr.f32.gmra.mxu1 %v1080_v62 }
 0x1bb   :  { %v1081_v3 = vmax.f32 %v995_v1, 0.0  ;;  %v1010_v5 = vadd.f32 %v1790_v2, %v2368_v7 }
 0x1bc   :  { %v1004_v6 = vpop.f32.mrf.mxu0 }
 0x1bd   :  { %v1005_v8 = vadd.f32 %v2368_v7, %v1004_v6  ;;  %1865 = vmatprep.mubr.f32.mxu1 %v1081_v3  ;;  %v1084_v10 = vmax.f32 %v1010_v5, 0.0 }
 0x1be   :  { %v1793_v38 = vpop.f32.mrf.mxu0  ;;  %1866 = vmatmul.mubr.f32.gmra.mxu1 %v1082_v4 }
 0x1bf   :  { %v1083_v9 = vmax.f32 %v1005_v8, 0.0  ;;  %v1020_v11 = vadd.f32 %v1793_v38, %v2368_v7 }
 0x1c0   :  { %v1014_v12 = vpop.f32.mrf.mxu0 }
 0x1c1   :  { %v1015_v13 = vadd.f32 %v2368_v7, %v1014_v12  ;;  %1868 = vmatprep.mubr.f32.mxu1 %v1083_v9  ;;  %v1086_v16 = vmax.f32 %v1020_v11, 0.0 }
 0x1c2   :  { %v1796_v14 = vpop.f32.mrf.mxu0  ;;  %1869 = vmatmul.mubr.f32.gmra.mxu1 %v1084_v10 }
 0x1c3   :  { %v1085_v15 = vmax.f32 %v1015_v13, 0.0  ;;  %v1030_v17 = vadd.f32 %v1796_v14, %v2368_v7 }
 0x1c4   :  { %v1024_v18 = vpop.f32.mrf.mxu0 }
 0x1c5   :  { %v1025_v19 = vadd.f32 %v2368_v7, %v1024_v18  ;;  %1871 = vmatprep.mubr.f32.mxu1 %v1085_v15  ;;  %v1088_v22 = vmax.f32 %v1030_v17, 0.0 }
 0x1c6   :  { %v1799_v20 = vpop.f32.mrf.mxu0  ;;  %1872 = vmatmul.mubr.f32.gmra.mxu1 %v1086_v16 }
 0x1c7   :  { %v1087_v21 = vmax.f32 %v1025_v19, 0.0  ;;  %v1040_v23 = vadd.f32 %v1799_v20, %v2368_v7 }
 0x1c8   :  { %v1034_v24 = vpop.f32.mrf.mxu0 }
 0x1c9   :  { %v1035_v25 = vadd.f32 %v2368_v7, %v1034_v24  ;;  %1874 = vmatprep.mubr.f32.mxu1 %v1087_v21  ;;  %v1090_v28 = vmax.f32 %v1040_v23, 0.0 }
 0x1ca   :  { %v1802_v26 = vpop.f32.mrf.mxu0  ;;  %1875 = vmatmul.mubr.f32.gmra.mxu1 %v1088_v22 }
 0x1cb   :  { %v1089_v27 = vmax.f32 %v1035_v25, 0.0  ;;  %v1050_v29 = vadd.f32 %v1802_v26, %v2368_v7 }
 0x1cc   :  { %v1044_v30 = vpop.f32.mrf.mxu0 }
 0x1cd   :  { %v1045_v31 = vadd.f32 %v2368_v7, %v1044_v30  ;;  %1877 = vmatprep.mubr.f32.mxu1 %v1089_v27  ;;  %v1092_v34 = vmax.f32 %v1050_v29, 0.0 }
 0x1ce   :  { %v1805_v32 = vpop.f32.mrf.mxu0  ;;  %1878 = vmatmul.mubr.f32.gmra.mxu1 %v1090_v28 }
 0x1cf   :  { %v1091_v33 = vmax.f32 %v1045_v31, 0.0  ;;  %v1060_v35 = vadd.f32 %v1805_v32, %v2368_v7 }
 0x1d0   :  { %v1054_v36 = vpop.f32.mrf.mxu0 }
 0x1d1   :  { %v1055_v37 = vadd.f32 %v2368_v7, %v1054_v36  ;;  %1880 = vmatprep.mubr.f32.mxu1 %v1091_v33  ;;  %v1094_v40 = vmax.f32 %v1060_v35, 0.0 }
 0x1d2   :  { %1881 = vmatmul.mubr.f32.gmra.mxu1 %v1092_v34 }
 0x1d3   :  { %v1093_v39 = vmax.f32 %v1055_v37, 0.0 }
 0x1d5   :  { %1883 = vmatprep.mubr.f32.mxu1 %v1093_v39 }
 0x1d6   :  { %1884 = vmatmul.mubr.f32.gmra.mxu1 %v1094_v40 }
 0x25a   :  { %v1840_v42 = vpop.f32.mrf.mxu1 }
 0x25b   :  { %v1190_v43 = vadd.f32 %v1840_v42, %v2405_v41 }
 0x25c   :  { %v1184_v44 = vpop.f32.mrf.mxu1 }
 0x25d   :  { %1344 = vst [vmem:[#allocation2 + $0x8] sm:$0xff] %v1190_v43  ;;  %v1185_v45 = vadd.f32 %v2405_v41, %v1184_v44 }
 0x25e   :  { %v1843_v46 = vpop.f32.mrf.mxu1 }
 0x25f   :  { %1343 = vst [vmem:[#allocation2] sm:$0xff] %v1185_v45  ;;  %v1200_v7 = vadd.f32 %v1843_v46, %v2405_v41 }
 0x260   :  { %v1194_v47 = vpop.f32.mrf.mxu1 }
 0x261   :  { %1346 = vst [vmem:[#allocation2 + $0x18] sm:$0xff] %v1200_v7  ;;  %v1195_v48 = vadd.f32 %v2405_v41, %v1194_v47 }
 0x262   :  { %v1846_v49 = vpop.f32.mrf.mxu1 }
 0x263   :  { %1345 = vst [vmem:[#allocation2 + $0x10] sm:$0xff] %v1195_v48  ;;  %v1210_v50 = vadd.f32 %v1846_v49, %v2405_v41 }
 0x264   :  { %v1204_v51 = vpop.f32.mrf.mxu1 }
 0x265   :  { %1348 = vst [vmem:[#allocation2 + $0x28] sm:$0xff] %v1210_v50  ;;  %v1205_v52 = vadd.f32 %v2405_v41, %v1204_v51 }
 0x266   :  { %v1849_v53 = vpop.f32.mrf.mxu1 }
 0x267   :  { %1347 = vst [vmem:[#allocation2 + $0x20] sm:$0xff] %v1205_v52  ;;  %v1220_v54 = vadd.f32 %v1849_v53, %v2405_v41 }
 0x268   :  { %v1214_v55 = vpop.f32.mrf.mxu1 }
 0x269   :  { %1350 = vst [vmem:[#allocation2 + $0x38] sm:$0xff] %v1220_v54  ;;  %v1215_v56 = vadd.f32 %v2405_v41, %v1214_v55 }
 0x26a   :  { %v1852_v57 = vpop.f32.mrf.mxu1 }
 0x26b   :  { %1349 = vst [vmem:[#allocation2 + $0x30] sm:$0xff] %v1215_v56  ;;  %v1230_v58 = vadd.f32 %v1852_v57, %v2405_v41 }
 0x26c   :  { %v1224_v59 = vpop.f32.mrf.mxu1 }
 0x26d   :  { %1352 = vst [vmem:[#allocation2 + $0x48] sm:$0xff] %v1230_v58  ;;  %v1225_v60 = vadd.f32 %v2405_v41, %v1224_v59 }
 0x26e   :  { %v1855_v61 = vpop.f32.mrf.mxu1 }
 0x26f   :  { %1351 = vst [vmem:[#allocation2 + $0x40] sm:$0xff] %v1225_v60  ;;  %v1240_v62 = vadd.f32 %v1855_v61, %v2405_v41 }
 0x270   :  { %v1234_v63 = vpop.f32.mrf.mxu1 }
 0x271   :  { %1354 = vst [vmem:[#allocation2 + $0x58] sm:$0xff] %v1240_v62  ;;  %v1235_v0 = vadd.f32 %v2405_v41, %v1234_v63 }
 0x272   :  { %v1858_v1 = vpop.f32.mrf.mxu1 }
 0x273   :  { %1353 = vst [vmem:[#allocation2 + $0x50] sm:$0xff] %v1235_v0  ;;  %v1250_v2 = vadd.f32 %v1858_v1, %v2405_v41 }
 0x274   :  { %v1244_v3 = vpop.f32.mrf.mxu1 }
 0x275   :  { %1356 = vst [vmem:[#allocation2 + $0x68] sm:$0xff] %v1250_v2  ;;  %v1245_v4 = vadd.f32 %v2405_v41, %v1244_v3 }
 0x276   :  { %v1861_v5 = vpop.f32.mrf.mxu1 }
 0x277   :  { %1355 = vst [vmem:[#allocation2 + $0x60] sm:$0xff] %v1245_v4  ;;  %v1260_v6 = vadd.f32 %v1861_v5, %v2405_v41 }
 0x278   :  { %v1254_v8 = vpop.f32.mrf.mxu1 }
 0x279   :  { %1358 = vst [vmem:[#allocation2 + $0x78] sm:$0xff] %v1260_v6  ;;  %v1255_v38 = vadd.f32 %v2405_v41, %v1254_v8 }
 0x27a   :  { %v1864_v9 = vpop.f32.mrf.mxu1 }
 0x27b   :  { %1357 = vst [vmem:[#allocation2 + $0x70] sm:$0xff] %v1255_v38  ;;  %v1270_v10 = vadd.f32 %v1864_v9, %v2405_v41 }
 0x27c   :  { %v1264_v11 = vpop.f32.mrf.mxu1 }
 0x27d   :  { %1360 = vst [vmem:[#allocation2 + $0x88] sm:$0xff] %v1270_v10  ;;  %v1265_v12 = vadd.f32 %v2405_v41, %v1264_v11 }
 0x27e   :  { %v1867_v13 = vpop.f32.mrf.mxu1 }
 0x27f   :  { %1359 = vst [vmem:[#allocation2 + $0x80] sm:$0xff] %v1265_v12  ;;  %v1280_v14 = vadd.f32 %v1867_v13, %v2405_v41 }
 0x280   :  { %v1274_v15 = vpop.f32.mrf.mxu1 }
 0x281   :  { %1362 = vst [vmem:[#allocation2 + $0x98] sm:$0xff] %v1280_v14  ;;  %v1275_v16 = vadd.f32 %v2405_v41, %v1274_v15 }
 0x282   :  { %v1870_v17 = vpop.f32.mrf.mxu1 }
 0x283   :  { %1361 = vst [vmem:[#allocation2 + $0x90] sm:$0xff] %v1275_v16  ;;  %v1290_v18 = vadd.f32 %v1870_v17, %v2405_v41 }
 0x284   :  { %v1284_v19 = vpop.f32.mrf.mxu1 }
 0x285   :  { %1364 = vst [vmem:[#allocation2 + $0xa8] sm:$0xff] %v1290_v18  ;;  %v1285_v20 = vadd.f32 %v2405_v41, %v1284_v19 }
 0x286   :  { %v1873_v21 = vpop.f32.mrf.mxu1 }
 0x287   :  { %1363 = vst [vmem:[#allocation2 + $0xa0] sm:$0xff] %v1285_v20  ;;  %v1300_v22 = vadd.f32 %v1873_v21, %v2405_v41 }
 0x288   :  { %v1294_v23 = vpop.f32.mrf.mxu1 }
 0x289   :  { %1366 = vst [vmem:[#allocation2 + $0xb8] sm:$0xff] %v1300_v22  ;;  %v1295_v24 = vadd.f32 %v2405_v41, %v1294_v23 }
 0x28a   :  { %v1876_v25 = vpop.f32.mrf.mxu1 }
 0x28b   :  { %1365 = vst [vmem:[#allocation2 + $0xb0] sm:$0xff] %v1295_v24  ;;  %v1310_v26 = vadd.f32 %v1876_v25, %v2405_v41 }
 0x28c   :  { %v1304_v27 = vpop.f32.mrf.mxu1 }
 0x28d   :  { %1368 = vst [vmem:[#allocation2 + $0xc8] sm:$0xff] %v1310_v26  ;;  %v1305_v28 = vadd.f32 %v2405_v41, %v1304_v27 }
 0x28e   :  { %v1879_v29 = vpop.f32.mrf.mxu1 }
 0x28f   :  { %1367 = vst [vmem:[#allocation2 + $0xc0] sm:$0xff] %v1305_v28  ;;  %v1320_v30 = vadd.f32 %v1879_v29, %v2405_v41 }
 0x290   :  { %v1314_v31 = vpop.f32.mrf.mxu1 }
 0x291   :  { %1370 = vst [vmem:[#allocation2 + $0xd8] sm:$0xff] %v1320_v30  ;;  %v1315_v32 = vadd.f32 %v2405_v41, %v1314_v31 }
 0x292   :  { %v1882_v33 = vpop.f32.mrf.mxu1 }
 0x293   :  { %1369 = vst [vmem:[#allocation2 + $0xd0] sm:$0xff] %v1315_v32  ;;  %v1330_v34 = vadd.f32 %v1882_v33, %v2405_v41 }
 0x294   :  { %v1324_v35 = vpop.f32.mrf.mxu1 }
 0x295   :  { %1372 = vst [vmem:[#allocation2 + $0xe8] sm:$0xff] %v1330_v34  ;;  %v1325_v36 = vadd.f32 %v2405_v41, %v1324_v35 }
 0x296   :  { %v1885_v37 = vpop.f32.mrf.mxu1 }
 0x297   :  { %1371 = vst [vmem:[#allocation2 + $0xe0] sm:$0xff] %v1325_v36  ;;  %v1340_v39 = vadd.f32 %v1885_v37, %v2405_v41 }
 0x298   :  { %v1334_v40 = vpop.f32.mrf.mxu1 }
 0x299   :  { %1374 = vst [vmem:[#allocation2 + $0xf8] sm:$0xff] %v1340_v39  ;;  %v1335_v42 = vadd.f32 %v2405_v41, %v1334_v40 }
 0x29b   :  { %1373 = vst [vmem:[#allocation2 + $0xf0] sm:$0xff] %v1335_v42 }
 0x29c   :  { %1900 = shalt.err (!%p1897_p4)
}
 0x29d   :  { %s1912_s23 = smov 128   ;;  %s1913_s2 = smov 8  }
 0x29e   :  { %1386 = dma.vmem_to_hbm [thread:$0]  %s1381_s21, 4096, %s2451_s9, [#allocation3], %s1912_s23, %s1912_s23, %s1913_s2  }
 0x29f   :  { %1909 = dma.done.wait [#allocation3], 4096  }
 0x2a0   :  { %1910 = vsyncadd [#allocation3], 4294963200 }
 0x2a1   :  { %1390 = vsyncpa [#allocation3], 1 }

</bundles_post_ra>
